<compile_context>
chip_gen: v7x
topology: tpu7x:2x2x1
jax: 0.10.0
libtpu: 0.0.40
codegen_flags: <defaults>
</compile_context>

<pallas_src>
import functools

import jax
import jax.numpy as jnp
from jax import lax
from jax.experimental import pallas as pl
from jax.experimental.pallas import tpu as pltpu

EPS = 1e-5


def _round_up(x, m):
    return (x + m - 1) // m * m


def _pad2(a, rows, cols):
    pr = rows - a.shape[0]
    pc = cols - a.shape[1]
    if pr == 0 and pc == 0:
        return a
    return jnp.pad(a, ((0, pr), (0, pc)))


# ---------------------------------------------------------------------------
# Pass 1: y1 = x @ w1 (1x1 conv as channel matmul) + BN1 sum / sumsq stats.
# Grid = (core, p_tile); stats are per-core partials (accumulated over p_tile).
# Padded rows of x are exact zeros, so they contribute nothing to the stats.
# ---------------------------------------------------------------------------
def _mm_stats_kernel(x_ref, w_ref, y_ref, sum_ref, ssq_ref):
    i = pl.program_id(1)

    @pl.when(i == 0)
    def _():
        sum_ref[...] = jnp.zeros_like(sum_ref)
        ssq_ref[...] = jnp.zeros_like(ssq_ref)

    y = jnp.dot(x_ref[...], w_ref[...], preferred_element_type=jnp.float32)
    y_ref[...] = y.astype(y_ref.dtype)                       # bf16 store
    sum_ref[...] += jnp.sum(y, axis=0, keepdims=True)[None]
    ssq_ref[...] += jnp.sum(y * y, axis=0, keepdims=True)[None]


# ---------------------------------------------------------------------------
# Pass 2: BN1 (folded scale/shift) + residual add + ReLU + y2 = h @ w2
#         + BN2 sum / sumsq partial stats.  Padded rows are masked out of the
#         stats only on tiles that actually contain padding (pl.when gate).
# ---------------------------------------------------------------------------
def _bn_add_relu_mm_kernel(y1_ref, res_ref, w2_ref, sc_ref, sh_ref,
                           y2_ref, sum_ref, ssq_ref,
                           *, tp, tiles_per_core, p_true, p_pad):
    c = pl.program_id(0)
    i = pl.program_id(1)

    @pl.when(i == 0)
    def _():
        sum_ref[...] = jnp.zeros_like(sum_ref)
        ssq_ref[...] = jnp.zeros_like(ssq_ref)

    h = y1_ref[...].astype(jnp.float32) * sc_ref[...] + sh_ref[...]   # BN1
    h = jnp.maximum(h + res_ref[...].astype(jnp.float32), 0.0)        # add+ReLU

    y2 = jnp.dot(h.astype(jnp.bfloat16), w2_ref[...],
                 preferred_element_type=jnp.float32)
    y2_ref[...] = y2

    def _acc(v):
        sum_ref[...] += jnp.sum(v, axis=0, keepdims=True)[None]
        ssq_ref[...] += jnp.sum(v * v, axis=0, keepdims=True)[None]

    if p_pad == p_true:
        _acc(y2)
    else:
        tile_base = (c * tiles_per_core + i) * tp
        has_pad = tile_base + tp > p_true

        @pl.when(jnp.logical_not(has_pad))
        def _():
            _acc(y2)

        @pl.when(has_pad)
        def _():
            rows = tile_base + lax.broadcasted_iota(jnp.int32, (tp, 1), 0)
            _acc(jnp.where(rows < p_true, y2, 0.0))


def fused_block(x97, x107, w1, g1, b1, w2, g2, b2, *, tp=512, n_cores=2):
    """x97: [N, Cin, H, W] NCHW; x107: [N, Cmid, ceil(H/2), ceil(W/2)] NCHW.
    w1: [Cin, Cmid], w2: [Cmid, Cmid] (1x1 conv weights as channel matrices)."""
    N, Cin, H, W = x97.shape
    Cmid = w1.shape[1]

    # 1x1 conv, stride 2  ==  spatial ::2 subsample + channel matmul
    x_sub = x97[:, :, ::2, ::2]
    H2, W2 = x_sub.shape[2], x_sub.shape[3]
    assert x107.shape == (N, Cmid, H2, W2), (x107.shape, (N, Cmid, H2, W2))
    P = N * H2 * W2

    # (8,128)-friendly channel padding; P split across n_cores parallel slots,
    # each slot iterating tiles of tp rows.
    cin_p = _round_up(Cin, 128)
    cmid_p = _round_up(Cmid, 128)
    rows_per_core = -(-P // n_cores)
    tp = max(16, min(_round_up(tp, 16), _round_up(rows_per_core, 16)))
    tiles_per_core = -(-rows_per_core // tp)
    p_pad = n_cores * tiles_per_core * tp

    # ---- layout glue (plain JAX): NCHW -> flattened channels-last [P, C] ----
    # TODO(synk): fold the transpose + ::2 subsample into the kernel path.
    x_flat = jnp.transpose(x_sub, (0, 2, 3, 1)).reshape(P, Cin)
    res_flat = jnp.transpose(x107, (0, 2, 3, 1)).reshape(P, Cmid)

    x_p = _pad2(x_flat, p_pad, cin_p).astype(jnp.bfloat16)    # MXU operand
    res_p = _pad2(res_flat, p_pad, cmid_p).astype(jnp.bfloat16)
    w1_p = _pad2(w1, cin_p, cmid_p).astype(jnp.bfloat16)
    w2_p = _pad2(w2, cmid_p, cmid_p).astype(jnp.bfloat16)

    def _pad_vec(v, fill):
        return jnp.pad(v, (0, cmid_p - Cmid),
                       constant_values=fill).reshape(1, cmid_p)

    g1p, b1p = _pad_vec(g1, 1.0), _pad_vec(b1, 0.0)
    g2p, b2p = _pad_vec(g2, 1.0), _pad_vec(b2, 0.0)

    row_x = pl.BlockSpec((tp, cin_p), lambda c, i: (c * tiles_per_core + i, 0))
    row_mid = pl.BlockSpec((tp, cmid_p), lambda c, i: (c * tiles_per_core + i, 0))
    w1_spec = pl.BlockSpec((cin_p, cmid_p), lambda c, i: (0, 0))      # resident
    w2_spec = pl.BlockSpec((cmid_p, cmid_p), lambda c, i: (0, 0))     # resident
    vec_spec = pl.BlockSpec((1, cmid_p), lambda c, i: (0, 0))
    stat_spec = pl.BlockSpec((1, 1, cmid_p), lambda c, i: (c, 0, 0))  # per-core

    cp = pltpu.CompilerParams(
        dimension_semantics=("parallel", "arbitrary"),
        vmem_limit_bytes=48 * 1024 * 1024)

    # ---- pass 1: y1 = x @ w1  + per-core BN1 statistics -------------------
    y1_p, s1, ss1 = pl.pallas_call(
        _mm_stats_kernel,
        grid=(n_cores, tiles_per_core),
        in_specs=[row_x, w1_spec],
        out_specs=[row_mid, stat_spec, stat_spec],
        out_shape=[jax.ShapeDtypeStruct((p_pad, cmid_p), jnp.bfloat16),
                   jax.ShapeDtypeStruct((n_cores, 1, cmid_p), jnp.float32),
                   jax.ShapeDtypeStruct((n_cores, 1, cmid_p), jnp.float32)],
        compiler_params=cp,
        cost_estimate=pl.CostEstimate(
            flops=2 * p_pad * cin_p * cmid_p + 3 * p_pad * cmid_p,
            transcendentals=0,
            bytes_accessed=(p_pad * cin_p * 2 + cin_p * cmid_p * 2
                            + p_pad * cmid_p * 2)),
    )(x_p, w1_p)

    # BN1 batch stats (training mode, biased variance) — tiny, plain JAX.
    s1 = jnp.sum(s1, axis=0)
    ss1 = jnp.sum(ss1, axis=0)
    mean1 = s1 / P
    var1 = jnp.maximum(ss1 / P - mean1 * mean1, 0.0)
    scale1 = g1p * lax.rsqrt(var1 + EPS)
    shift1 = b1p - mean1 * scale1

    # ---- pass 2: BN1 apply + add + ReLU + y2 = h @ w2 + BN2 statistics ----
    kern2 = functools.partial(_bn_add_relu_mm_kernel, tp=tp,
                              tiles_per_core=tiles_per_core,
                              p_true=P, p_pad=p_pad)
    y2_p, s2, ss2 = pl.pallas_call(
        kern2,
        grid=(n_cores, tiles_per_core),
        in_specs=[row_mid, row_mid, w2_spec, vec_spec, vec_spec],
        out_specs=[row_mid, stat_spec, stat_spec],
        out_shape=[jax.ShapeDtypeStruct((p_pad, cmid_p), jnp.float32),
                   jax.ShapeDtypeStruct((n_cores, 1, cmid_p), jnp.float32),
                   jax.ShapeDtypeStruct((n_cores, 1, cmid_p), jnp.float32)],
        compiler_params=cp,
        cost_estimate=pl.CostEstimate(
            flops=2 * p_pad * cmid_p * cmid_p + 8 * p_pad * cmid_p,
            transcendentals=0,
            bytes_accessed=(2 * p_pad * cmid_p * 2 + cmid_p * cmid_p * 2
                            + p_pad * cmid_p * 4)),
    )(y1_p, res_p, w2_p, scale1, shift1)

    s2 = jnp.sum(s2, axis=0)
    ss2 = jnp.sum(ss2, axis=0)
    mean2 = s2 / P
    var2 = jnp.maximum(ss2 / P - mean2 * mean2, 0.0)
    scale2 = g2p * lax.rsqrt(var2 + EPS)
    shift2 = b2p - mean2 * scale2

    # ---- BN2 affine fused by XLA into the slice/reshape/transpose epilogue --
    out_flat = y2_p[:P, :Cmid] * scale2[:, :Cmid] + shift2[:, :Cmid]
    return jnp.transpose(out_flat.reshape(N, H2, W2, Cmid), (0, 3, 1, 2))


def reference(x97, x107, w1, g1, b1, w2, g2, b2, *, mirror_kernel=True):
    """Pure-JAX reference. mirror_kernel=True mirrors the kernel's bf16
    MXU-operand casts and bf16 storage of y1/res; False is the exact f32
    module semantics."""
    N, Cin, H, W = x97.shape
    Cmid = w1.shape[1]
    x_sub = x97[:, :, ::2, ::2]
    H2, W2 = x_sub.shape[2], x_sub.shape[3]
    x = jnp.transpose(x_sub, (0, 2, 3, 1)).reshape(-1, Cin)
    r = jnp.transpose(x107, (0, 2, 3, 1)).reshape(-1, Cmid)

    if mirror_kernel:
        bf = lambda a: a.astype(jnp.bfloat16)
        y1 = jnp.dot(bf(x), bf(w1), preferred_element_type=jnp.float32)
        m1 = jnp.mean(y1, axis=0, keepdims=True)
        v1 = jnp.maximum(jnp.mean(y1 * y1, axis=0, keepdims=True) - m1 * m1, 0.0)
        sc1 = g1 * lax.rsqrt(v1 + EPS)
        sh1 = b1 - m1 * sc1
        h = jnp.maximum(bf(y1).astype(jnp.float32) * sc1 + sh1
                        + bf(r).astype(jnp.float32), 0.0)
        y2 = jnp.dot(bf(h), bf(w2), preferred_element_type=jnp.float32)
        m2 = jnp.mean(y2, axis=0, keepdims=True)
        v2 = jnp.maximum(jnp.mean(y2 * y2, axis=0, keepdims=True) - m2 * m2, 0.0)
        sc2 = g2 * lax.rsqrt(v2 + EPS)
        out = y2 * sc2 + (b2 - m2 * sc2)
    else:
        y1 = jnp.dot(x, w1)
        m1 = y1.mean(0, keepdims=True)
        v1 = ((y1 - m1) ** 2).mean(0, keepdims=True)
        y1n = (y1 - m1) * (g1 * lax.rsqrt(v1 + EPS)) + b1
        h = jnp.maximum(y1n + r, 0.0)
        y2 = jnp.dot(h, w2)
        m2 = y2.mean(0, keepdims=True)
        v2 = ((y2 - m2) ** 2).mean(0, keepdims=True)
        out = (y2 - m2) * (g2 * lax.rsqrt(v2 + EPS)) + b2
    return jnp.transpose(out.reshape(N, H2, W2, Cmid), (0, 3, 1, 2))


if __name__ == "__main__":
    # Small shapes consistent with the module (672 -> 1344 channels, 28x28
    # halved by the stride-2 1x1 conv): keep the 1:2 channel ratio and the
    # spatial halving, exercise channel padding (96, 192 not lane multiples),
    # row padding (P = 2*14*14 = 392), the 2-way core split and a multi-tile
    # grid (tp=64 -> grid (2, 4), last two tiles contain padded rows).
    N, Cin, Cmid, H, W = 2, 96, 192, 28, 28

    keys = jax.random.split(jax.random.PRNGKey(0), 8)
    x97 = jax.random.normal(keys[0], (N, Cin, H, W), dtype=jnp.float32)
    x107 = jax.random.normal(keys[1], (N, Cmid, H // 2, W // 2),
                             dtype=jnp.float32)

    w1 = jax.random.normal(keys[2], (Cin, Cmid), dtype=jnp.float32) * 0.05
    w2 = jax.random.normal(keys[3], (Cmid, Cmid), dtype=jnp.float32) * 0.05
    g1 = 1.0 + 0.1 * jax.random.normal(keys[4], (Cmid,), dtype=jnp.float32)
    b1 = 0.1 * jax.random.normal(keys[5], (Cmid,), dtype=jnp.float32)
    g2 = 1.0 + 0.1 * jax.random.normal(keys[6], (Cmid,), dtype=jnp.float32)
    b2 = 0.1 * jax.random.normal(keys[7], (Cmid,), dtype=jnp.float32)

    out = fused_block(x97, x107, w1, g1, b1, w2, g2, b2, tp=64)
    out = jax.block_until_ready(out)
    assert out.shape == (N, Cmid, H // 2, W // 2), out.shape

    # Tight check vs. a reference with identical bf16 casts / storage.
    ref_bf16 = reference(x97, x107, w1, g1, b1, w2, g2, b2, mirror_kernel=True)
    err = float(jnp.abs(out - ref_bf16).max())
    assert jnp.allclose(out, ref_bf16, atol=1e-2, rtol=1e-2), err

    # Coarse sanity vs. the exact-f32 module semantics (bf16 quantization only).
    ref_f32 = reference(x97, x107, w1, g1, b1, w2, g2, b2, mirror_kernel=False)
    err32 = float(jnp.abs(out - ref_f32).max())
    assert jnp.allclose(out, ref_f32, atol=2e-1, rtol=2e-1), err32

    print("KERNEL_OK")
</pallas_src>

<mosaic_0001>
module attributes {stable_mosaic.version = 11 : i64} {
  func.func @_mm_stats_kernel(%arg0: i32, %arg1: i32, %arg2: memref<64x128xbf16, #tpu.memory_space<vmem>>, %arg3: memref<128x256xbf16, #tpu.memory_space<vmem>>, %arg4: memref<64x256xbf16, #tpu.memory_space<vmem>>, %arg5: memref<1x1x256xf32, #tpu.memory_space<vmem>>, %arg6: memref<1x1x256xf32, #tpu.memory_space<vmem>>) attributes {dimension_semantics = [#tpu.dimension_semantics<parallel>, #tpu.dimension_semantics<arbitrary>], iteration_bounds = array<i64: 2, 4>, scalar_prefetch = 0 : i64, scratch_operands = 0 : i64, tpu.core_type = #tpu.core_type<tc>, window_params = [{transform_indices = @transform_0, window_bounds = array<i64: 64, 128>}, {pipeline_mode = #tpu.pipeline_mode<synchronous>, transform_indices = @transform_1, window_bounds = array<i64: 128, 256>}, {transform_indices = @transform_2, window_bounds = array<i64: 64, 256>}, {transform_indices = @transform_3, window_bounds = array<i64: 1, 1, 256>}, {transform_indices = @transform_4, window_bounds = array<i64: 1, 1, 256>}]} {
    %c0_i32 = arith.constant 0 : i32
    %0 = arith.cmpi eq, %arg1, %c0_i32 : i32
    %1 = arith.extui %0 : i1 to i32
    %c0_i32_0 = arith.constant 0 : i32
    %2 = arith.cmpi ne, %1, %c0_i32_0 : i32
    scf.if %2 {
      %cst_20 = arith.constant 0.000000e+00 : f32
      %21 = vector.broadcast %cst_20 : f32 to vector<1x1x256xf32>
      %c0_21 = arith.constant 0 : index
      %c0_22 = arith.constant 0 : index
      %c0_23 = arith.constant 0 : index
      %22 = vector.load %arg5[%c0_21, %c0_22, %c0_23] : memref<1x1x256xf32, #tpu.memory_space<vmem>>, vector<1x1x256xf32>
      tpu.vector_store %arg5[%c0_21, %c0_22, %c0_23], %21 {strides = array<i32>} : memref<1x1x256xf32, #tpu.memory_space<vmem>>, vector<1x1x256xf32>,
      %cst_24 = arith.constant 0.000000e+00 : f32
      %23 = vector.broadcast %cst_24 : f32 to vector<1x1x256xf32>
      %c0_25 = arith.constant 0 : index
      %c0_26 = arith.constant 0 : index
      %c0_27 = arith.constant 0 : index
      %24 = vector.load %arg6[%c0_25, %c0_26, %c0_27] : memref<1x1x256xf32, #tpu.memory_space<vmem>>, vector<1x1x256xf32>
      tpu.vector_store %arg6[%c0_25, %c0_26, %c0_27], %23 {strides = array<i32>} : memref<1x1x256xf32, #tpu.memory_space<vmem>>, vector<1x1x256xf32>,
    } else {
    }
    %c0 = arith.constant 0 : index
    %c0_1 = arith.constant 0 : index
    %3 = vector.load %arg2[%c0, %c0_1] : memref<64x128xbf16, #tpu.memory_space<vmem>>, vector<64x128xbf16>
    %c0_2 = arith.constant 0 : index
    %c0_3 = arith.constant 0 : index
    %4 = vector.load %arg3[%c0_2, %c0_3] : memref<128x256xbf16, #tpu.memory_space<vmem>>, vector<128x256xbf16>
    %cst = arith.constant dense<0.000000e+00> : vector<64x256xf32>
    %5 = tpu.matmul %3, %4, %cst {dimension_numbers = #tpu.dot_dimension_numbers<[1], [0], [0], [1], [0, 0, 1, 1], [], []>} : vector<64x128xbf16>, vector<128x256xbf16>, vector<64x256xf32> -> vector<64x256xf32>
    %6 = arith.truncf %5 : vector<64x256xf32> to vector<64x256xbf16>
    %c0_4 = arith.constant 0 : index
    %c0_5 = arith.constant 0 : index
    %7 = vector.load %arg4[%c0_4, %c0_5] : memref<64x256xbf16, #tpu.memory_space<vmem>>, vector<64x256xbf16>
    tpu.vector_store %arg4[%c0_4, %c0_5], %6 {strides = array<i32>} : memref<64x256xbf16, #tpu.memory_space<vmem>>, vector<64x256xbf16>,
    %c0_6 = arith.constant 0 : index
    %c0_7 = arith.constant 0 : index
    %c0_8 = arith.constant 0 : index
    %8 = vector.load %arg5[%c0_6, %c0_7, %c0_8] : memref<1x1x256xf32, #tpu.memory_space<vmem>>, vector<1x1x256xf32>
    %cst_9 = arith.constant dense<0.000000e+00> : vector<256xf32>
    %9 = vector.multi_reduction <add>, %5, %cst_9 [0] : vector<64x256xf32> to vector<256xf32>
    %10 = vector.shape_cast %9 : vector<256xf32> to vector<1x256xf32>
    %11 = vector.shape_cast %10 : vector<1x256xf32> to vector<1x1x256xf32>
    %12 = arith.addf %8, %11 : vector<1x1x256xf32>
    %c0_10 = arith.constant 0 : index
    %c0_11 = arith.constant 0 : index
    %c0_12 = arith.constant 0 : index
    %13 = vector.load %arg5[%c0_10, %c0_11, %c0_12] : memref<1x1x256xf32, #tpu.memory_space<vmem>>, vector<1x1x256xf32>
    tpu.vector_store %arg5[%c0_10, %c0_11, %c0_12], %12 {strides = array<i32>} : memref<1x1x256xf32, #tpu.memory_space<vmem>>, vector<1x1x256xf32>,
    %c0_13 = arith.constant 0 : index
    %c0_14 = arith.constant 0 : index
    %c0_15 = arith.constant 0 : index
    %14 = vector.load %arg6[%c0_13, %c0_14, %c0_15] : memref<1x1x256xf32, #tpu.memory_space<vmem>>, vector<1x1x256xf32>
    %15 = arith.mulf %5, %5 : vector<64x256xf32>
    %cst_16 = arith.constant dense<0.000000e+00> : vector<256xf32>
    %16 = vector.multi_reduction <add>, %15, %cst_16 [0] : vector<64x256xf32> to vector<256xf32>
    %17 = vector.shape_cast %16 : vector<256xf32> to vector<1x256xf32>
    %18 = vector.shape_cast %17 : vector<1x256xf32> to vector<1x1x256xf32>
    %19 = arith.addf %14, %18 : vector<1x1x256xf32>
    %c0_17 = arith.constant 0 : index
    %c0_18 = arith.constant 0 : index
    %c0_19 = arith.constant 0 : index
    %20 = vector.load %arg6[%c0_17, %c0_18, %c0_19] : memref<1x1x256xf32, #tpu.memory_space<vmem>>, vector<1x1x256xf32>
    tpu.vector_store %arg6[%c0_17, %c0_18, %c0_19], %19 {strides = array<i32>} : memref<1x1x256xf32, #tpu.memory_space<vmem>>, vector<1x1x256xf32>,
    return
  }
  func.func @transform_0(%arg0: i32, %arg1: i32) -> (i32, i32) {
    %c4_i32 = arith.constant 4 : i32
    %0 = arith.muli %arg0, %c4_i32 : i32
    %1 = arith.addi %0, %arg1 : i32
    %c0_i32 = arith.constant 0 : i32
    %c0_i32_0 = arith.constant 0 : i32
    return %1, %c0_i32 : i32, i32
  }
  func.func @transform_1(%arg0: i32, %arg1: i32) -> (i32, i32) {
    %c0_i32 = arith.constant 0 : i32
    %c0_i32_0 = arith.constant 0 : i32
    %c0_i32_1 = arith.constant 0 : i32
    return %c0_i32, %c0_i32_0 : i32, i32
  }
  func.func @transform_2(%arg0: i32, %arg1: i32) -> (i32, i32) {
    %c4_i32 = arith.constant 4 : i32
    %0 = arith.muli %arg0, %c4_i32 : i32
    %1 = arith.addi %0, %arg1 : i32
    %c0_i32 = arith.constant 0 : i32
    %c0_i32_0 = arith.constant 0 : i32
    return %1, %c0_i32 : i32, i32
  }
  func.func @transform_3(%arg0: i32, %arg1: i32) -> (i32, i32, i32) {
    %c0_i32 = arith.constant 0 : i32
    %c0_i32_0 = arith.constant 0 : i32
    %c0_i32_1 = arith.constant 0 : i32
    return %arg0, %c0_i32, %c0_i32_0 : i32, i32, i32
  }
  func.func @transform_4(%arg0: i32, %arg1: i32) -> (i32, i32, i32) {
    %c0_i32 = arith.constant 0 : i32
    %c0_i32_0 = arith.constant 0 : i32
    %c0_i32_1 = arith.constant 0 : i32
    return %arg0, %c0_i32, %c0_i32_0 : i32, i32, i32
  }
}

</mosaic_0001>

<bundles_post_ra>
// kernel: tpu_custom_call.1
= control target key start
LH: loop header
LB: loop body
LE: loop exit
PB: predicated region body
PF: predicated region fallthrough
CT: control target
= control target key end

     0   :  { %s1820_s0 = inlined_call_operand.hbm [shape: bf16[512,128], index: 0, kind: input, shape index: {}]   ;;  %s1821_s1 = inlined_call_operand.hbm [shape: bf16[128,256], index: 1, kind: input, shape index: {}]   ;;  %s1822_s2 = inlined_call_operand.hbm [shape: bf16[512,256], index: 2, kind: output, shape index: {0}]   ;;  %s1823_s3 = inlined_call_operand.hbm [shape: f32[2,1,256], index: 3, kind: output, shape index: {1}]   ;;  %s1824_s4 = inlined_call_operand.hbm [shape: f32[2,1,256], index: 4, kind: output, shape index: {2}]  }
   0x1   :  { %1842 = sst [smem:[#allocation22_spill]] %s1821_s1 }
   0x2   :  { %1843 = sst [smem:[#allocation23_spill]] %s1823_s3 }
   0x3   :  { %1844 = sst [smem:[#allocation24_spill]] %s1824_s4 }
   0x4   :  { %10 = vsyncpa [#allocation3], 0 }
   0x5   :  { %12 = vsyncpa [#allocation3 + $0x1], 0 }
   0x6   :  { %13 = vsyncpa [#allocation6], 0 }
   0x7   :  { %14 = vsyncpa [#allocation4], 0 }
   0x8   :  { %16 = vsyncpa [#allocation4 + $0x1], 0 }
   0x9   :  { %17 = vsyncpa [#allocation9], 0 }
   0xa   :  { %19 = vsyncpa [#allocation9 + $0x1], 0  ;;  %s1408_s15 = smov 0   ;;  %s1410_s16 = smov 0  }
   0xb   :  { %s1412_s17 = smov 0   ;;  %s1414_s18 = smov 0  }
   0xc   :  { %s1416_s19 = smov 0   ;;  %s1418_s20 = smov 0  }
   0xd   :  { %s1420_s21 = smov 0   ;;  %s1422_s22 = smov 0  }
   0xe   :  { %s1424_s23 = smov 0   ;;  %s1426_s24 = smov 0  }
   0xf   :  { %s1428_s25 = smov 0  }
  0x10 LB: > { %1845 = sst [smem:[#allocation15_spill]] %s1339_s18  ;;  %s1462_s26 = sadd.s32 4294967295, %s1367_s25   ;;  %s1367_s25 = sphi %s1428_s25, %s25_s25   ;;  %s1363_s24 = sphi %s1426_s24, %s1891_s24   ;;  %s1359_s23 = sphi %s1424_s23, %s1890_s23   ;;  %s1355_s22 = sphi %s1422_s22, %s1889_s22   ;;  %s1351_s21 = sphi %s1420_s21, %s1881_s21   ;;  %s1347_s20 = sphi %s1418_s20, %s1888_s20   ;;  %s1343_s19 = sphi %s1416_s19, %s1887_s19   ;;  %s1339_s18 = sphi %s1414_s18, %s1886_s18   ;;  %s1335_s17 = sphi %s1412_s17, %s1885_s17   ;;  %s1331_s16 = sphi %s1410_s16, %s1884_s16   ;;  %s1327_s15 = sphi %s1408_s15, %s1883_s15  }
  0x11   : > { %1846 = sst [smem:[#allocation16_spill]] %s1359_s23  ;;  %s1825_s27 = sadd.s32 4294967294, %s1367_s25  }
  0x12   : > { %p61_p0 = scmp.ne.s32.totalorder %s1343_s19, %s1339_s18  ;;  %p1826_p1 = scmp.eq.s32.totalorder %s1462_s26, 0 }
  0x13   : > { %p1827_p2 = scmp.eq.s32.totalorder %s1462_s26, 7  ;;  %p116_p3 = scmp.eq.s32.totalorder %s1825_s27, 7 }
  0x14   : > { %p1473_p4 = por %p1826_p1, %p61_p0  ;;  %p135_p6 = scmp.ne.s32.totalorder %s1335_s17, %s1331_s16 }
  0x15   : > { %p1478_p5 = por %p116_p3, %p61_p0  ;;  %p141_p7 = scmp.ne.s32.totalorder %s1331_s16, %s1327_s15 }
  0x16   : > { %s1847_s28 = scalar_select %p1473_p4, 1, 0 }
  0x17   : > { %s1848_s30 = scalar_select %p1478_p5, 1, 0 }
  0x18   : > { %p879_p8 = scmp.ge.s32.totalorder %s1367_s25, 1  ;;  %p1488_p9 = por %p135_p6, %p1827_p2 }
  0x19   : > { %1849 = sst [smem:[#allocation17_spill]] %s1848_s30  ;;  %p175_p10 = scmp.lt.s32.totalorder %s1367_s25, 9 }
  0x1a   : > { %s1850_s5 = scalar_select %p1488_p9, 1, 0 }
  0x1b   : > { %p1493_p11 = por %p141_p7, %p116_p3  ;;  %p1497_p12 = pnand %p879_p8, %p175_p10 }
  0x1c   : > { %1851 = sst [smem:[#allocation18_spill]] %s1850_s5  ;;  %s1369_s8 = smov [#allocation5]  }
  0x1d   : > { %s1852_s6 = scalar_select %p1493_p11, 1, 0 }
  0x1e   : > { %s1854_s7 = scalar_select %p1497_p12, 1, 0 }
  0x1f   : > { %1853 = sst [smem:[#allocation19_spill]] %s1852_s6  ;;  %s187_s9 = sshll.u32 %s1369_s8, 4  ;;  %s188_s9 = int_to_ptr.vmem [resolvable:$true] %s187_s9 }
  0x20   : > { %p975_p13 = pneg %p1497_p12  ;;  %s1856_s1 = sld [smem:[#allocation22_spill]] }
  0x22   : > { %p1505_p0 = pnand %p975_p13, %p1826_p1 }
  0x24   : > { %p1125_p6 = pneg %p1505_p0 }
  0x26   : > { %s1123_s13 = scalar_lea.hbm %s1856_s1, 2048 }
  0x27   : > { %p1124_p3 = scmp.ne.s32.totalorder %s1856_s1, %s1123_s13  ;;  %p1130_p10 = scmp.lt.u32.totalorder %s1123_s13, %s1856_s1 }
  0x29   : > { %p1126_p7 = pnand %p1125_p6, %p1124_p3 }
  0x2b   : > { %p1127_p8 = pneg %p1126_p7 }
  0x2d   : > { %p1132_p13 = pnand %p1130_p10, %p1127_p8 }
  0x2f   : > { %1135 = shalt.err (!%p1132_p13)
}
  0x30   : > { %s1136_s29 = scalar_lea.vmem %s188_s9, 2048  ;;  %p1144_p5 = scmp.lt.s32.totalorder %s188_s9, %s188_s9 }
  0x31   : > { %p1137_p1 = scmp.ne.s32.totalorder %s188_s9, %s1136_s29  ;;  %p1145_p9 = scmp.lt.s32.totalorder %s1136_s29, %s1136_s29 }
  0x33   : > { %p1139_p2 = pnand %p1137_p1, %p1125_p6  ;;  %p1146_p4 = por %p1145_p9, %p1144_p5 }
  0x35   : > { %p1140_p11 = pneg %p1139_p2 }
  0x37   : > { %p1147_p12 = pnand %p1146_p4, %p1140_p11 }
  0x39   : > { %1150 = shalt.err (!%p1147_p12)
}
  0x3a   : > { %s1370_s11 = smov 128   ;;  %s1371_s27 = smov 8  }
  0x3b   : > { %978 = dma.hbm_to_vmem [thread:$0]  (!%p1505_p0), %s1856_s1, 2048, %s188_s9, [#allocation6], %s1370_s11, %s1370_s11, %s1371_s27  }
  0x3c   : > { %s34_s13 = sadd.s32 1, %s1359_s23  ;;  %s37_s14 = sadd.s32 1, %s1363_s24 }
  0x3d   : > { %p35_p1 = scmp.ge.s32.totalorder %s34_s13, 4  ;;  %s875_s15 = sshll.u32 %s1363_s24, 2 }
  0x3e   : > { %s42_s8 = sadd.s32 %s1359_s23, %s875_s15  ;;  %s48_s6 = sadd.s32 1, %s1347_s20 }
  0x3f   : > { %s1893_s13 = smov (%p35_p1, %s34_s13), 0  ;;  %s1895_s14 = smov (!%p35_p1, %s37_s14), %s1363_s24 }
  0x40   : > { %p55_p2 = scmp.ne.s32.totalorder %s1347_s20, %s1343_s19  ;;  %p56_p4 = scmp.eq.s32.totalorder %s1367_s25, 0 }
  0x41   : > { %p39_p5 = scmp.ge.s32.totalorder %s1895_s14, 2  ;;  %p994_p9 = scmp.lt.s32.totalorder %s1367_s25, 8 }
  0x42   : > { %p1537_p11 = por %p56_p4, %p55_p2  ;;  %p1858_p12 = scmp.eq.s32.totalorder %s1462_s26, 7 }
  0x43   : > { %s1897_s14 = smov (%p39_p5, %s1895_s14), 0  ;;  %s201_s11 = sand.u32 1, %s1347_s20  }
  0x44   : > { %p1543_p0 = por %p1858_p12, %p55_p2  ;;  %1861 = sst [smem:[#allocation21_spill]] %s1897_s14 }
  0x45   : > { %s934_s27 = sshll.u32 %s42_s8, 9  ;;  %s876_s12 = sshll.u32 %s1897_s14, 2 }
  0x46   : > { %s1859_s10 = scalar_select %p1543_p0, 1, 0 }
  0x47   : > { %s122_s29 = ssub.s32 %s1363_s24, %s1897_s14  ;;  %s44_s15 = sadd.s32 %s876_s12, %s1893_s13 }
  0x48   : > { %1860 = sst [smem:[#allocation20_spill]] %s1859_s10  ;;  %p123_p3 = scmp.eq.s32.totalorder %s122_s29, 0 }
  0x49   : > { %s45_s1 = ssub.s32 %s42_s8, %s44_s15  ;;  %s882_s23 = sshll.u32 %s201_s11, 5 }
  0x4a   : > { %p46_p6 = scmp.eq.s32.totalorder %s45_s1, 0  ;;  %s1862_s30 = sadd.s32 1, %s1335_s17 }
  0x4b   : > { %s1557_s18 = scalar_select %p123_p3, %s1335_s17, %s1862_s30  }
  0x4c   : > { %s1560_s4 = scalar_select %p46_p6, %s1347_s20, %s48_s6  }
  0x4d   : > { %s1565_s10 = scalar_lea.hbm %s1820_s0, %s934_s27  ;;  %s205_s14 = scalar_lea.vmem [#allocation2], %s882_s23 }
  0x4e   : > { %s214_s12 = sshll.u32 %s205_s14, 4  ;;  %p1571_p7 = pnand %p994_p9, %p1537_p11  ;;  %s1575_s12 = int_to_ptr.vmem [resolvable:$true] %s214_s12 }
  0x4f   : > { %s1577_s30 = scalar_lea.sflag [#allocation3], %s201_s11  ;;  %s1151_s3 = scalar_lea.hbm %s1565_s10, 512 }
  0x50   : > { %p1152_p8 = scmp.ne.s32.totalorder %s1565_s10, %s1151_s3  ;;  %p1153_p10 = pneg %p1571_p7 }
  0x51   : > { %s1156_s6 = scalar_lea.hbm %s1820_s0, 4096  ;;  %p1157_p2 = scmp.lt.u32.totalorder %s1565_s10, %s1820_s0 }
  0x52   : > { %p1154_p13 = pnand %p1153_p10, %p1152_p8  ;;  %p1158_p4 = scmp.lt.u32.totalorder %s1156_s6, %s1151_s3 }
  0x53   : > { %p1160_p9 = scmp.lt.u32.totalorder %s1151_s3, %s1565_s10 }
  0x54   : > { %p1155_p1 = pneg %p1154_p13  ;;  %p1159_p5 = por %p1158_p4, %p1157_p2 }
  0x56   : > { %p1161_p11 = por %p1160_p9, %p1159_p5 }
  0x58   : > { %p1162_p12 = pnand %p1161_p11, %p1155_p1 }
  0x5a   : > { %1165 = shalt.err (!%p1162_p12)
}
  0x5b   : > { %s1166_s9 = scalar_lea.vmem %s1575_s12, 512  ;;  %s1372_s11 = smov [#allocation2]  }
  0x5c   : > { %p1167_p3 = scmp.ne.s32.totalorder %s1575_s12, %s1166_s9  ;;  %s1171_s27 = sshll.u32 %s1372_s11, 4  ;;  %s1172_s27 = int_to_ptr.vmem [resolvable:$false] %s1171_s27 }
  0x5d   : > { %s1173_s29 = scalar_lea.vmem %s1172_s27, 1024  ;;  %p1174_p13 = scmp.lt.s32.totalorder %s1575_s12, %s1172_s27 }
  0x5e   : > { %p1169_p6 = pnand %p1167_p3, %p1153_p10  ;;  %p1175_p2 = scmp.lt.s32.totalorder %s1173_s29, %s1166_s9 }
  0x60   : > { %p1170_p8 = pneg %p1169_p6  ;;  %p1176_p4 = por %p1175_p2, %p1174_p13 }
  0x62   : > { %p1177_p5 = pnand %p1176_p4, %p1170_p8 }
  0x64   : > { %1180 = shalt.err (!%p1177_p5)
}
  0x65   : > { %s1373_s15 = smov 64   ;;  %s1374_s3 = smov 4  }
  0x66   : > { %982 = dma.hbm_to_vmem [thread:$0]  (!%p1571_p7), %s1565_s10, 512, %s1575_s12, %s1577_s30, %s1373_s15, %s1373_s15, %s1374_s3  }
  0x67   : > { %p1864_p10 = scmp.ne.s32.totalorder %s1854_s7, 0 }
  0x68   : > { %s1608_s23 = sand.u32 (!%p1864_p10), 1, %s1343_s19   ;;  %p1865_p1 = scmp.ne.s32.totalorder (!%p1864_p10), %s1847_s28, 0 }
  0x69   : > { %226 = sbr.rel (%p1864_p10) target bundleno = 462 (0x1ce), region = 28  ;;  %s887_s5 = sshll.u32 (!%p1864_p10), %s1608_s23, 5 }
  0x6a   : > { %s229_s6 = scalar_lea.sflag (!%p1864_p10), [#allocation3], %s1608_s23  ;;  %s1612_s14 = scalar_lea.vmem (!%p1864_p10), [#allocation2], %s887_s5 }
  0x70   : > { %1310 = dma.done.wait (%p1865_p1), %s229_s6, 512  }
  0x71   : > { %1312 = vsyncadd (%p1865_p1), %s229_s6, 4294966784  ;;  %p1866_p7 = scmp.eq.s32.totalorder %s1462_s26, 0 }
  0x73   : > { %1314 = dma.done.wait (%p1866_p7), [#allocation6], 2048   ;;  %p1867_p9 = pmov %p1866_p7 }
  0x74   : > { %s889_s7 = sshll.u32 %s1608_s23, 6  ;;  %s261_s10 = sand.u32 1, %s1331_s16  }
  0x75   : > { %1316 = vsyncadd (%p1867_p9), [#allocation6], 4294965248  ;;  %s890_s12 = sshll.u32 %s261_s10, 1  ;;  %s1624_s1 = scalar_lea.vmem [#allocation7], %s889_s7 }
  0x76   : > { %s1626_s30 = scalar_lea.vmem [#allocation8], %s890_s12  ;;  %s1628_s8 = scalar_lea.vmem [#allocation10], %s890_s12 }
  0x77   : > { %p892_p11 = scmp.ne.s32.totalorder %s1351_s21, 0 }
  0x78   : > { %v282_v0 = vlaneseq (!%p892_p11)  ;;  %v1375_v1 = vmov (!%p892_p11), 0.0  }
  0x79   : > { %281 = sbr.rel (%p892_p11) target bundleno = 128 (0x80), region = 40 }
  0x7a   : > { %vm284_vm0 = vcmp.lt.s32.totalorder (!%p892_p11), %v282_v0, 256 }
  0x7b   : > { %286 = vst.msk [vmem:[%s1626_s30] sm:$0x3] (!%p892_p11), %vm284_vm0, %v1375_v1  ;;  %287 = vst.msk [vmem:[%s1628_s8] sm:$0x3] (!%p892_p11), %vm284_vm0, %v1375_v1 }
  0x80 PF: > { %v1095_v2 = vld [vmem:[#allocation5 + $0x4] ss:$8 sps:$4 sm:$0xff]   ;;  %v1097_v3 = vld [vmem:[#allocation5] ss:$8 sps:$4 sm:$0xff]   ;;  %v1376_v4 = vmov 0   ;;  %v1120_v20 = vld [vmem:[%s1612_s14 + $0x10] sm:$0xff]  }
  0x81   : > { %448 = vmatprep.mubr.bf16.mxu0 %v1376_v4  ;;  %468 = vmatprep.mubr.bf16.mxu1 %v1376_v4  ;;  %v1098_v5 = vld [vmem:[#allocation5 + $0x14] ss:$8 sps:$4 sm:$0xff]   ;;  %v1100_v6 = vld [vmem:[#allocation5 + $0x10] ss:$8 sps:$4 sm:$0xff]   ;;  %v1101_v7 = vld [vmem:[#allocation5 + $0x24] ss:$8 sps:$4 sm:$0xff]  }
  0x82   : > { %416 = vmatprep.subr.bf16.mxu0 %v1095_v2  ;;  %947 = vmatprep.subr.bf16.mxu1 %v1095_v2  ;;  %v1103_v8 = vld [vmem:[#allocation5 + $0x20] ss:$8 sps:$4 sm:$0xff]   ;;  %v1104_v9 = vld [vmem:[#allocation5 + $0x34] ss:$8 sps:$4 sm:$0xff]   ;;  %v1106_v10 = vld [vmem:[#allocation5 + $0x30] ss:$8 sps:$4 sm:$0xff]  }
  0x83   : > { %417 = vmatpush1.bf16.msra.mxu0 %v1097_v3  ;;  %955 = vmatpush1.bf16.msra.mxu1 %v1097_v3  ;;  %v1107_v11 = vld [vmem:[#allocation5 + $0x44] ss:$8 sps:$4 sm:$0xff]   ;;  %v1109_v12 = vld [vmem:[#allocation5 + $0x40] ss:$8 sps:$4 sm:$0xff]   ;;  %v1110_v13 = vld [vmem:[#allocation5 + $0x54] ss:$8 sps:$4 sm:$0xff]  }
  0x84   : > { %418 = vmatprep.subr.bf16.mxu0 %v1098_v5  ;;  %948 = vmatprep.subr.bf16.mxu1 %v1098_v5  ;;  %v1112_v14 = vld [vmem:[#allocation5 + $0x50] ss:$8 sps:$4 sm:$0xff]   ;;  %v1113_v15 = vld [vmem:[#allocation5 + $0x64] ss:$8 sps:$4 sm:$0xff]   ;;  %v1115_v16 = vld [vmem:[#allocation5 + $0x60] ss:$8 sps:$4 sm:$0xff]  }
  0x85   : > { %v1116_v17 = vld [vmem:[#allocation5 + $0x74] ss:$8 sps:$4 sm:$0xff]   ;;  %v1118_v18 = vld [vmem:[#allocation5 + $0x70] ss:$8 sps:$4 sm:$0xff]   ;;  %v1119_v19 = vld [vmem:[%s1612_s14] sm:$0xff]   ;;  %s924_s28 = sshll.u32 %s1355_s22, 2 }
  0x86   : > { %v1121_v21 = vld [vmem:[%s1612_s14 + $0x8] sm:$0xff]   ;;  %v1122_v22 = vld [vmem:[%s1612_s14 + $0x18] sm:$0xff]   ;;  %s678_s9 = sadd.s32 %s1351_s21, %s924_s28  ;;  %s686_s27 = sshll.u32 %s1624_s1, 4  ;;  %s1661_s27 = int_to_ptr.vmem [resolvable:$true] %s686_s27 }
  0x87   : > { %419 = vmatpush1.bf16.msra.mxu0 %v1100_v6  ;;  %956 = vmatpush1.bf16.msra.mxu1 %v1100_v6  ;;  %s944_s11 = sshll.u32 %s678_s9, 10  ;;  %s660_s5 = scalar_lea.sflag [#allocation4], %s1608_s23 }
  0x88   : > { %420 = vmatprep.subr.bf16.mxu0 %v1101_v7  ;;  %949 = vmatprep.subr.bf16.mxu1 %v1101_v7  ;;  %s1659_s15 = scalar_lea.hbm %s1822_s2, %s944_s11  ;;  %s1181_s6 = scalar_lea.vmem %s1661_s27, 1024 }
  0x89   : > { %p1182_p12 = scmp.ne.s32.totalorder %s1661_s27, %s1181_s6  ;;  %s1377_s14 = smov [#allocation7]  }
  0x8a   : > { %s1185_s7 = sshll.u32 %s1377_s14, 4  ;;  %s1186_s7 = int_to_ptr.vmem [resolvable:$false] %s1185_s7 }
  0x8b   : > { %421 = vmatpush1.bf16.msra.mxu0 %v1103_v8  ;;  %957 = vmatpush1.bf16.msra.mxu1 %v1103_v8  ;;  %p1183_p3 = pnand %p1182_p12, %p1543_p0  ;;  %s1187_s10 = scalar_lea.vmem %s1186_s7, 2048 }
  0x8c   : > { %422 = vmatprep.subr.bf16.mxu0 %v1104_v9  ;;  %950 = vmatprep.subr.bf16.mxu1 %v1104_v9  ;;  %p1188_p8 = scmp.lt.s32.totalorder %s1661_s27, %s1186_s7  ;;  %p1189_p13 = scmp.lt.s32.totalorder %s1187_s10, %s1181_s6 }
  0x8d   : > { %p1184_p6 = pneg %p1183_p3 }
  0x8e   : > { %p1190_p2 = por %p1189_p13, %p1188_p8 }
  0x8f   : > { %423 = vmatpush1.bf16.msra.mxu0 %v1106_v10  ;;  %958 = vmatpush1.bf16.msra.mxu1 %v1106_v10 }
  0x90   : > { %424 = vmatprep.subr.bf16.mxu0 %v1107_v11  ;;  %951 = vmatprep.subr.bf16.mxu1 %v1107_v11  ;;  %p1191_p4 = pnand %p1190_p2, %p1184_p6 }
  0x93   : > { %425 = vmatpush1.bf16.msra.mxu0 %v1109_v12  ;;  %959 = vmatpush1.bf16.msra.mxu1 %v1109_v12 }
  0x94   : > { %426 = vmatprep.subr.bf16.mxu0 %v1110_v13  ;;  %952 = vmatprep.subr.bf16.mxu1 %v1110_v13 }
  0x97   : > { %427 = vmatpush1.bf16.msra.mxu0 %v1112_v14  ;;  %960 = vmatpush1.bf16.msra.mxu1 %v1112_v14 }
  0x98   : > { %428 = vmatprep.subr.bf16.mxu0 %v1113_v15  ;;  %953 = vmatprep.subr.bf16.mxu1 %v1113_v15 }
  0x9b   : > { %429 = vmatpush1.bf16.msra.mxu0 %v1115_v16  ;;  %961 = vmatpush1.bf16.msra.mxu1 %v1115_v16 }
  0x9c   : > { %430 = vmatprep.subr.bf16.mxu0 %v1116_v17  ;;  %954 = vmatprep.subr.bf16.mxu1 %v1116_v17 }
  0x9f   : > { %431 = vmatpush1.bf16.msra.mxu0 %v1118_v18  ;;  %962 = vmatpush1.bf16.msra.mxu1 %v1118_v18 }
  0xa2   : > { %449 = vmatmul.mubr.bf16.vlgmr.msra.gmra.mrb[0].mxu0 %v1119_v19  ;;  %469 = vmatmul.mubr.bf16.vlgmr.msra.gmra.mrb[0].mxu1 %v1120_v20 }
  0xa3   : > { %458 = vmatprep.mubr.bf16.mxu0 %v1376_v4  ;;  %478 = vmatprep.mubr.bf16.mxu1 %v1376_v4 }
  0xaa   : > { %459 = vmatmul.mubr.bf16.gmra.mrb[4].mxu0 %v1121_v21  ;;  %479 = vmatmul.mubr.bf16.gmra.mrb[4].mxu1 %v1122_v22 }
 0x175   : > { %v450_v23 = vpop.f32.mrb[0].mxu0  ;;  %v470_v24 = vpop.f32.mrb[0].mxu1 }
 0x176   : > { %v452_v25 = vpop.f32.mrb[1].mxu0  ;;  %v472_v26 = vpop.f32.mrb[1].mxu1  ;;  %v597_v31 = vmul.f32 %v450_v23, %v450_v23  ;;  %v605_v0 = vmul.f32 %v470_v24, %v470_v24 }
 0x177   : > { %v935_v27 = vpack.c.bf16 %v452_v25, %v450_v23  ;;  %v454_v28 = vpop.f32.mrb[2].mxu0  ;;  %v939_v29 = vpack.c.bf16 %v472_v26, %v470_v24  ;;  %v474_v30 = vpop.f32.mrb[2].mxu1  ;;  %v598_v32 = vmul.f32 %v452_v25, %v452_v25  ;;  %v606_v4 = vmul.f32 %v472_v26, %v472_v26 }
 0x178   : > { %v546_v33 = vadd.f32 %v454_v28, %v450_v23  ;;  %v599_v34 = vmul.f32 %v454_v28, %v454_v28  ;;  %v456_v35 = vpop.f32.mrb[3].mxu0  ;;  %v476_v36 = vpop.f32.mrb[3].mxu1  ;;  %v607_v7 = vmul.f32 %v474_v30, %v474_v30 }
 0x179   : > { %537 = vst [vmem:[%s1624_s1] sm:$0xff] %v935_v27  ;;  %v936_v37 = vpack.c.bf16 %v456_v35, %v454_v28  ;;  %v559_v38 = vadd.f32 %v456_v35, %v452_v25  ;;  %v600_v39 = vmul.f32 %v456_v35, %v456_v35  ;;  %541 = vst [vmem:[%s1624_s1 + $0x20] sm:$0xff] %v939_v29 }
 0x17a   : > { %v940_v40 = vpack.c.bf16 %v476_v36, %v474_v30  ;;  %v613_v41 = vadd.f32 %v599_v34, %v597_v31  ;;  %v608_v11 = vmul.f32 %v476_v36, %v476_v36 }
 0x17b   : > { %538 = vst [vmem:[%s1624_s1 + $0x8] sm:$0xff] %v936_v37  ;;  %v626_v42 = vadd.f32 %v600_v39, %v598_v32 }
 0x17c   : > { %542 = vst [vmem:[%s1624_s1 + $0x28] sm:$0xff] %v940_v40 }
 0x17d   : > { %v460_v43 = vpop.f32.mrb[4].mxu0  ;;  %v1643_v44 = vpop.f32.mrb[4].mxu1 }
 0x17e   : > { %v547_v45 = vadd.f32 %v546_v33, %v460_v43  ;;  %v601_v46 = vmul.f32 %v460_v43, %v460_v43  ;;  %v462_v47 = vpop.f32.mrb[5].mxu0  ;;  %v1645_v48 = vpop.f32.mrb[5].mxu1  ;;  %v609_v10 = vmul.f32 %v1643_v44, %v1643_v44 }
 0x17f   : > { %v937_v49 = vpack.c.bf16 %v462_v47, %v460_v43  ;;  %v560_v50 = vadd.f32 %v559_v38, %v462_v47  ;;  %v602_v51 = vmul.f32 %v462_v47, %v462_v47  ;;  %v464_v52 = vpop.f32.mrb[6].mxu0  ;;  %v941_v53 = vpack.c.bf16 %v1645_v48, %v1643_v44  ;;  %v1650_v54 = vpop.f32.mrb[6].mxu1 }
 0x180   : > { %v614_v55 = vadd.f32 %v613_v41, %v601_v46  ;;  %v548_v56 = vadd.f32 %v547_v45, %v464_v52  ;;  %v603_v57 = vmul.f32 %v464_v52, %v464_v52  ;;  %v466_v58 = vpop.f32.mrb[7].mxu0  ;;  %v1652_v59 = vpop.f32.mrb[7].mxu1  ;;  %v610_v14 = vmul.f32 %v1645_v48, %v1645_v48 }
 0x181   : > { %539 = vst [vmem:[%s1624_s1 + $0x10] sm:$0xff] %v937_v49  ;;  %v627_v60 = vadd.f32 %v626_v42, %v602_v51  ;;  %v938_v61 = vpack.c.bf16 %v466_v58, %v464_v52  ;;  %v561_v62 = vadd.f32 %v560_v50, %v466_v58  ;;  %v604_v63 = vmul.f32 %v466_v58, %v466_v58 }
 0x182   : > { %543 = vst [vmem:[%s1624_s1 + $0x30] sm:$0xff] %v941_v53  ;;  %v549_v1 = vadd.f32 %v548_v56, %v470_v24  ;;  %v615_v2 = vadd.f32 %v614_v55, %v603_v57  ;;  %v942_v3 = vpack.c.bf16 %v1652_v59, %v1650_v54 }
 0x183   : > { %540 = vst [vmem:[%s1624_s1 + $0x18] sm:$0xff] %v938_v61  ;;  %v562_v5 = vadd.f32 %v561_v62, %v472_v26  ;;  %v628_v6 = vadd.f32 %v627_v60, %v604_v63 }
 0x184   : > { %v616_v8 = vadd.f32 %v615_v2, %v605_v0  ;;  %v550_v9 = vadd.f32 %v549_v1, %v474_v30  ;;  %544 = vst [vmem:[%s1624_s1 + $0x38] sm:$0xff] %v942_v3 }
 0x185   : > { %v629_v12 = vadd.f32 %v628_v6, %v606_v4  ;;  %v563_v13 = vadd.f32 %v562_v5, %v476_v36 }
 0x186   : > { %1194 = shalt.err (!%p1191_p4)
}
 0x187   : > { %s1195_s12 = scalar_lea.hbm %s1659_s15, 1024  ;;  %s1199_s9 = scalar_lea.hbm %s1822_s2, 8192 }
 0x188   : > { %p1196_p5 = scmp.ne.s32.totalorder %s1659_s15, %s1195_s12  ;;  %p1200_p7 = scmp.lt.u32.totalorder %s1659_s15, %s1822_s2 }
 0x189   : > { %p1201_p9 = scmp.lt.u32.totalorder %s1199_s9, %s1195_s12  ;;  %p1203_p12 = scmp.lt.u32.totalorder %s1195_s12, %s1659_s15 }
 0x18a   : > { %p1197_p10 = pnand %p1196_p5, %p1543_p0 }
 0x18b   : > { %p1202_p11 = por %p1201_p9, %p1200_p7 }
 0x18c   : > { %p1198_p1 = pneg %p1197_p10 }
 0x18d   : > { %p1204_p3 = por %p1203_p12, %p1202_p11 }
 0x18f   : > { %p1205_p6 = pnand %p1204_p3, %p1198_p1 }
 0x191   : > { %1208 = shalt.err (!%p1205_p6)
}
 0x192   : > { %s1378_s29 = smov 128   ;;  %s1379_s6 = smov 8   ;;  %v551_v15 = vadd.f32 %v550_v9, %v1643_v44  ;;  %v617_v16 = vadd.f32 %v616_v8, %v607_v7  ;;  %v564_v17 = vadd.f32 %v563_v13, %v1645_v48  ;;  %v630_v18 = vadd.f32 %v629_v12, %v608_v11  ;;  %v545_v60 = vld [vmem:[%s1626_s30] sm:$0x3]  ;;  %v596_v0 = vld [vmem:[%s1628_s8] sm:$0x3] }
 0x193   : > { %969 = dma.vmem_to_hbm [thread:$0]  (%p1543_p0), %s1661_s27, 1024, %s1659_s15, %s660_s5, %s1378_s29, %s1378_s29, %s1379_s6   ;;  %v611_v21 = vmul.f32 %v1650_v54, %v1650_v54  ;;  %v612_v24 = vmul.f32 %v1652_v59, %v1652_v59  ;;  %v1380_v33 = vmov 1966171168   ;;  %v578_v35 = vlaneseq }
 0x194   : > { %v618_v19 = vadd.f32 %v617_v16, %v609_v10  ;;  %v552_v20 = vadd.f32 %v551_v15, %v1650_v54  ;;  %v631_v22 = vadd.f32 %v630_v18, %v610_v14  ;;  %v565_v23 = vadd.f32 %v564_v17, %v1652_v59  ;;  %s664_s23 = sand.u32 1, %s1462_s26   ;;  %s945_s27 = sshll.u32 %s1355_s22, 5 }
 0x195   : > { %v576_v34 = vunpack.c.l.s4 %v1380_v33  ;;  %v579_v45 = vshrl.u32 %v578_v35, 7  ;;  %s703_s15 = sshll.u32 %s1626_s30, 4  ;;  %s1869_s3 = sld [smem:[#allocation18_spill]]  ;;  %vm1707_vm1 = vcmp.lt.s32.totalorder %v578_v35, 256  ;;  %s1718_s15 = int_to_ptr.vmem [resolvable:$true] %s703_s15 }
 0x196   : > { %v553_v25 = vrot.slane %v552_v20, 4  ;;  %v619_v26 = vadd.f32 %v618_v19, %v611_v21  ;;  %v566_v27 = vrot.slane %v565_v23, 4  ;;  %v632_v28 = vadd.f32 %v631_v22, %v612_v24  ;;  %s717_s5 = sshll.u32 %s1628_s8, 4  ;;  %s1872_s10 = sld [smem:[#allocation23_spill]]  ;;  %s1728_s5 = int_to_ptr.vmem [resolvable:$true] %s717_s5 }
 0x197   : > { %v577_v44 = vunpack.c.0.s8 %v576_v34  ;;  %s1873_s1 = sld [smem:[#allocation24_spill]]  ;;  %s1730_s9 = scalar_lea.sflag [#allocation9], %s664_s23 }
 0x198   : > { %v554_v29 = vadd.f32 %v553_v25, %v552_v20  ;;  %v620_v30 = vrot.slane %v619_v26, 4  ;;  %v567_v31 = vadd.f32 %v566_v27, %v565_v23  ;;  %v633_v32 = vrot.slane %v632_v28, 4  ;;  %s1209_s11 = scalar_lea.vmem %s1718_s15, 32  ;;  %s1381_s21 = smov [#allocation8]  }
 0x199   : > { %v580_v54 = vsub.s32 %v577_v44, %v579_v45  ;;  %p1210_p0 = scmp.ne.s32.totalorder %s1718_s15, %s1209_s11  ;;  %s1213_s29 = sshll.u32 %s1381_s21, 4  ;;  %s1214_s29 = int_to_ptr.vmem [resolvable:$false] %s1213_s29 }
 0x19a   : > { %v555_v36 = vrot.slane %v554_v29, 2  ;;  %v621_v37 = vadd.f32 %v620_v30, %v619_v26  ;;  %v568_v38 = vrot.slane %v567_v31, 2  ;;  %v634_v39 = vadd.f32 %v633_v32, %v632_v28  ;;  %s1215_s6 = scalar_lea.vmem %s1214_s29, 64  ;;  %p1216_p4 = scmp.lt.s32.totalorder %s1718_s15, %s1214_s29 }
 0x19b   : > { %p1874_p8 = scmp.ne.s32.totalorder %s1869_s3, 0  ;;  %p1217_p5 = scmp.lt.s32.totalorder %s1215_s6, %s1209_s11 }
 0x19c   : > { %v556_v40 = vadd.f32 %v555_v36, %v554_v29  ;;  %v622_v41 = vrot.slane %v621_v37, 2  ;;  %v569_v42 = vadd.f32 %v568_v38, %v567_v31  ;;  %v635_v43 = vrot.slane %v634_v39, 2  ;;  %s1716_s12 = scalar_lea.hbm %s1872_s10, %s945_s27 }
 0x19d   : > { %s1726_s28 = scalar_lea.hbm %s1873_s1, %s945_s27  ;;  %p1211_p13 = pnand %p1210_p0, %p1874_p8 }
 0x19e   : > { %v557_v46 = vrot.slane %v556_v40, 1  ;;  %v623_v47 = vadd.f32 %v622_v41, %v621_v37  ;;  %v570_v48 = vrot.slane %v569_v42, 1  ;;  %v636_v49 = vadd.f32 %v635_v43, %v634_v39  ;;  %p1218_p10 = por %p1217_p5, %p1216_p4 }
 0x19f   : > { %p1212_p2 = pneg %p1211_p13 }
 0x1a0   : > { %v558_v50 = vadd.f32 %v557_v46, %v556_v40  ;;  %v624_v51 = vrot.slane %v623_v47, 1  ;;  %v571_v52 = vadd.f32 %v570_v48, %v569_v42  ;;  %v637_v53 = vrot.slane %v636_v49, 1 }
 0x1a1   : > { %p1219_p1 = pnand %p1218_p10, %p1212_p2 }
 0x1a2   : > { %v625_v55 = vadd.f32 %v624_v51, %v623_v47  ;;  %v574_v56 = vcombine.low %v558_v50, %v571_v52  ;;  %v638_v57 = vadd.f32 %v637_v53, %v636_v49 }
 0x1a4   : > { %v641_v58 = vcombine.low %v625_v55, %v638_v57  ;;  %v581_v59 = vrot.slane %v574_v56, %v580_v54 }
 0x1a6   : > { %v588_v61 = vrot.slane %v581_v59, %v580_v54  ;;  %v648_v62 = vrot.slane %v641_v58, %v580_v54 }
 0x1a8   : > { %v590_v1 = vadd.f32 %v588_v61, %v545_v60  ;;  %v655_v2 = vrot.slane %v648_v62, %v580_v54 }
 0x1aa   : > { %595 = vst.msk [vmem:[%s1626_s30] sm:$0x3] %vm1707_vm1, %v590_v1  ;;  %v657_v3 = vadd.f32 %v655_v2, %v596_v0 }
 0x1ab   : > { %1222 = shalt.err (!%p1219_p1)
}
 0x1ac   : > { %s1223_s30 = scalar_lea.hbm %s1716_s12, 32  ;;  %s1227_s14 = scalar_lea.hbm %s1872_s10, 64 }
 0x1ad   : > { %p1224_p7 = scmp.ne.s32.totalorder %s1716_s12, %s1223_s30  ;;  %p1228_p12 = scmp.lt.u32.totalorder %s1716_s12, %s1872_s10 }
 0x1ae   : > { %p1229_p3 = scmp.lt.u32.totalorder %s1227_s14, %s1223_s30  ;;  %p1231_p0 = scmp.lt.u32.totalorder %s1223_s30, %s1716_s12 }
 0x1af   : > { %p1225_p9 = pnand %p1224_p7, %p1874_p8 }
 0x1b0   : > { %p1230_p6 = por %p1229_p3, %p1228_p12 }
 0x1b1   : > { %p1226_p11 = pneg %p1225_p9 }
 0x1b2   : > { %p1232_p13 = por %p1231_p0, %p1230_p6 }
 0x1b4   : > { %p1233_p2 = pnand %p1232_p13, %p1226_p11 }
 0x1b6   : > { %1236 = shalt.err (!%p1233_p2)
}
 0x1b7   : > { %970 = dma.vmem_to_hbm [thread:$0]  (%p1874_p8), %s1718_s15, 32, %s1716_s12, %s1730_s9   ;;  %658 = vst.msk [vmem:[%s1628_s8] sm:$0x3] %vm1707_vm1, %v657_v3 }
 0x1b8   : > { %s1237_s26 = scalar_lea.vmem %s1728_s5, 32  ;;  %s1382_s11 = smov [#allocation10]  }
 0x1b9   : > { %p1238_p4 = scmp.ne.s32.totalorder %s1728_s5, %s1237_s26  ;;  %s1241_s21 = sshll.u32 %s1382_s11, 4  ;;  %s1242_s21 = int_to_ptr.vmem [resolvable:$false] %s1241_s21 }
 0x1ba   : > { %s1243_s29 = scalar_lea.vmem %s1242_s21, 64  ;;  %p1244_p1 = scmp.lt.s32.totalorder %s1728_s5, %s1242_s21 }
 0x1bb   : > { %p1239_p5 = pnand %p1238_p4, %p1874_p8  ;;  %p1245_p7 = scmp.lt.s32.totalorder %s1243_s29, %s1237_s26 }
 0x1bd   : > { %p1240_p10 = pneg %p1239_p5  ;;  %p1246_p9 = por %p1245_p7, %p1244_p1 }
 0x1bf   : > { %p1247_p11 = pnand %p1246_p9, %p1240_p10 }
 0x1c1   : > { %1250 = shalt.err (!%p1247_p11)
}
 0x1c2   : > { %s1251_s8 = scalar_lea.hbm %s1726_s28, 32  ;;  %s1255_s6 = scalar_lea.hbm %s1873_s1, 64 }
 0x1c3   : > { %p1252_p12 = scmp.ne.s32.totalorder %s1726_s28, %s1251_s8  ;;  %p1256_p0 = scmp.lt.u32.totalorder %s1726_s28, %s1873_s1 }
 0x1c4   : > { %p1257_p13 = scmp.lt.u32.totalorder %s1255_s6, %s1251_s8  ;;  %p1259_p4 = scmp.lt.u32.totalorder %s1251_s8, %s1726_s28 }
 0x1c5   : > { %p1253_p3 = pnand %p1252_p12, %p1874_p8 }
 0x1c6   : > { %p1258_p2 = por %p1257_p13, %p1256_p0 }
 0x1c7   : > { %p1254_p6 = pneg %p1253_p3 }
 0x1c8   : > { %p1260_p5 = por %p1259_p4, %p1258_p2 }
 0x1ca   : > { %p1261_p10 = pnand %p1260_p5, %p1254_p6 }
 0x1cc   : > { %1264 = shalt.err (!%p1261_p10)
}
 0x1cd   : > { %971 = dma.vmem_to_hbm [thread:$0]  (%p1874_p8), %s1728_s5, 32, %s1726_s28, %s1730_s9  }
 0x1ce PF: > { %s1875_s27 = sld [smem:[#allocation15_spill]]  ;;  %s1876_s14 = sld [smem:[#allocation17_spill]] }
 0x1cf   : > { %p996_p1 = scmp.ge.s32.totalorder %s1367_s25, 2 }
 0x1d4   : > { %s729_s7 = sand.u32 1, %s1875_s27   ;;  %p1877_p7 = scmp.ne.s32.totalorder %s1876_s14, 0 }
 0x1d5   : > { %s730_s22 = scalar_lea.sflag [#allocation4], %s729_s7 }
 0x1d6   : > { %p984_p9 = pnand %p996_p1, %p1877_p7 }
 0x1d8   : > { %1318 = dma.done.wait (!%p984_p9), %s730_s22, 1024  }
 0x1d9   : > { %1320 = vsyncadd (!%p984_p9), %s730_s22, 4294966272  ;;  %s1878_s26 = sadd.s32 4294967294, %s1367_s25   ;;  %s1879_s11 = sld [smem:[#allocation19_spill]] }
 0x1da   : > { %s738_s21 = sand.u32 1, %s1878_s26  }
 0x1db   : > { %s739_s3 = scalar_lea.sflag [#allocation9], %s738_s21 }
 0x1df   : > { %p1880_p11 = scmp.ne.s32.totalorder %s1879_s11, 0 }
 0x1e1   : > { %p987_p12 = pnand %p996_p1, %p1880_p11 }
 0x1e3   : > { %1322 = dma.done.wait (!%p987_p12), %s739_s3, 64  }
 0x1e4   : > { %1324 = vsyncadd (!%p987_p12), %s739_s3, 4294967232  ;;  %s25_s25 = sadd.s32 1, %s1367_s25   ;;  %s1881_s21 = sld [smem:[#allocation16_spill]] }
 0x1e5   : > { %p22_p8 = scmp.ge.s32.totalorder %s25_s25, 10   ;;  %s1882_s5 = sld [smem:[#allocation21_spill]] }
 0x1e6   : > { %s1883_s15 = smov %s1331_s16  ;;  %s1884_s16 = smov %s1335_s17 }
 0x1e7   : > { %s1885_s17 = smov %s1557_s18  ;;  %s1886_s18 = smov %s1343_s19 }
 0x1e8   : > { %s1887_s19 = smov %s1347_s20  ;;  %s1888_s20 = smov %s1560_s4 }
 0x1e9   : > { %s1889_s22 = smov %s1363_s24  ;;  %s1890_s23 = smov %s1893_s13 }
 0x1ea   :  { %24 = sbr.rel (!%p22_p8) target bundleno = 16 (0x10), region = 113 }
 0x1eb   : > { %s1891_s24 = smov %s1882_s5 }
 0x1f1   :  { %753 = vsyncpa [#allocation3], 1 }
 0x1f2   :  { %755 = vsyncpa [#allocation3 + $0x1], 1 }
 0x1f3   :  { %756 = vsyncpa [#allocation6], 1 }
 0x1f4   :  { %757 = vsyncpa [#allocation4], 1 }
 0x1f5   :  { %759 = vsyncpa [#allocation4 + $0x1], 1 }
 0x1f6   :  { %760 = vsyncpa [#allocation9], 1 }
 0x1f7   :  { %762 = vsyncpa [#allocation9 + $0x1], 1 }

</bundles_post_ra>
